<compile_context>
chip_gen: v5e
topology: v5e:2x2
jax: 0.10.0
libtpu: 0.0.40
codegen_flags: <defaults>
</compile_context>

<pallas_src>
import functools

import jax
import jax.numpy as jnp
from jax import lax
from jax.experimental import pallas as pl
from jax.experimental.pallas import tpu as pltpu


def _round_up(x, m):
    return (x + m - 1) // m * m


# ---------------------------------------------------------------------------
# Pallas kernel 1: segment-sum ("scatter_reduce") via ONE one-hot MXU matmul.
#   idx    : (b, 1,  HWp) int32 segment id per pixel
#   feat_i : (b, c_i, HWp) f32 feature maps (2 or 3 of them)
#   out    : (b, CAT_pad, c_lane) f32; lanes [0:ctot) per-slot sums,
#            lane ctot = per-slot counts, remaining lanes zero padding.
# ---------------------------------------------------------------------------
def _segsum_kernel(idx_ref, *refs, n_feats):
    feat_refs = refs[:n_feats]
    out_ref = refs[n_feats]

    @pl.when(pl.program_id(1) == 0)
    def _():
        out_ref[...] = jnp.zeros(out_ref.shape, out_ref.dtype)

    idx = idx_ref[0]                                      # (1, TILE) int32
    cat_pad = out_ref.shape[1]
    c_lane = out_ref.shape[2]
    tile = idx.shape[1]
    ctot = sum(fr.shape[1] for fr in feat_refs)

    g_iota = lax.broadcasted_iota(jnp.int32, (cat_pad, tile), 0)
    onehot = (g_iota == idx).astype(jnp.bfloat16)         # (CAT_pad, TILE), exact

    # Assemble the fused RHS in VMEM: feature rows, then a ones row (counts)
    # followed by zero rows padding the sublanes up to c_lane.
    pad_rows = c_lane - ctot                              # >= 1
    row_iota = lax.broadcasted_iota(jnp.int32, (pad_rows, tile), 0)
    tail = (row_iota == 0).astype(jnp.float32)            # ones row + zero pad
    rhs = jnp.concatenate([fr[0] for fr in feat_refs] + [tail], axis=0)

    res = lax.dot_general(onehot, rhs.astype(jnp.bfloat16),
                          (((1,), (1,)), ((), ())),
                          preferred_element_type=jnp.float32)   # (CAT_pad, c_lane)
    out_ref[0] += res                                      # lane-dense update


def segment_mean(idx, feats, cat):
    """scatter_reduce(dim=2, 'mean', include_self=True) onto zeros.

    idx:   (b, HW) int32; feats: list of (b, c_i, HW) float arrays.
    Returns (b, cat, sum(c_i)) per-slot means (f32).
    """
    b, HW = idx.shape
    cs = [int(f.shape[1]) for f in feats]
    ctot = sum(cs)
    cat_pad = _round_up(cat, 8)
    c_lane = _round_up(ctot + 1, 128)

    tile = min(2048, _round_up(HW, 128))     # big tiles: amortize per-step cost
    hw_pad = _round_up(HW, tile)
    nt = hw_pad // tile
    if hw_pad != HW:
        # Padded pixels -> dump slot (cat-1) with zero features: only the
        # discarded dump slot is affected.
        idx = jnp.pad(idx, ((0, 0), (0, hw_pad - HW)), constant_values=cat - 1)
        feats = [jnp.pad(f, ((0, 0), (0, 0), (0, hw_pad - HW))) for f in feats]

    idx3 = idx.reshape(b, 1, hw_pad).astype(jnp.int32)
    feats = [f.astype(jnp.float32) for f in feats]

    # TODO(synk): when b == 1 on v7x, split the pixel axis into 2 "parallel"
    # partial accumulators summed outside so both TensorCores are used.
    kern = functools.partial(_segsum_kernel, n_feats=len(feats))
    out = pl.pallas_call(
        kern,
        out_shape=jax.ShapeDtypeStruct((b, cat_pad, c_lane), jnp.float32),
        grid_spec=pltpu.PrefetchScalarGridSpec(
            num_scalar_prefetch=0,
            grid=(b, nt),
            in_specs=[pl.BlockSpec((1, 1, tile), lambda ib, it: (ib, 0, it))]
                     + [pl.BlockSpec((1, ci, tile), lambda ib, it: (ib, 0, it))
                        for ci in cs],
            out_specs=pl.BlockSpec((1, cat_pad, c_lane),
                                   lambda ib, it: (ib, 0, 0))),
        compiler_params=pltpu.CompilerParams(
            dimension_semantics=("parallel", "arbitrary")),
    )(idx3, *feats)

    sums = out[:, :cat, :ctot]
    counts = out[:, :cat, ctot:ctot + 1]
    # include_self=True with zero init: mean = sum / (count + 1); empty slot -> 0
    return sums / (counts + 1.0)


# ---------------------------------------------------------------------------
# Pallas kernel 2: gather of the per-slot means back to pixels (torch.gather)
# via a one-hot matmul.  rk (c, CAT_pad) @ onehot(CAT_pad, TILE) -> (c, TILE),
# written lane-dense with HW on lanes.  f32 throughout (exact gather).
# ---------------------------------------------------------------------------
def _gather_means_kernel(idx_ref, rk_ref, out_ref):
    idx = idx_ref[0]                                      # (1, TILE) int32
    cat_pad = rk_ref.shape[2]
    tile = idx.shape[1]
    g_iota = lax.broadcasted_iota(jnp.int32, (cat_pad, tile), 0)
    onehot = (g_iota == idx).astype(jnp.float32)          # (CAT_pad, TILE)
    out_ref[0] = lax.dot_general(rk_ref[0], onehot, (((1,), (0,)), ((), ())),
                                 preferred_element_type=jnp.float32)


def gather_means(idx, rk, cat):
    """torch.gather(reduced_key_grid, dim=2, index): per-pixel slot-mean lookup.

    idx: (b, HW) int32; rk: (b, cat, c) f32.  Returns (b, c, HW) f32.
    """
    b, HW = idx.shape
    c = int(rk.shape[2])
    cat_pad = _round_up(cat, 8)
    tile = min(2048, _round_up(HW, 128))
    hw_pad = _round_up(HW, tile)
    nt = hw_pad // tile
    if hw_pad != HW:
        idx = jnp.pad(idx, ((0, 0), (0, hw_pad - HW)), constant_values=cat - 1)
    idx3 = idx.reshape(b, 1, hw_pad).astype(jnp.int32)

    rk_t = jnp.transpose(rk, (0, 2, 1)).astype(jnp.float32)       # (b, c, cat)
    rk_t = jnp.pad(rk_t, ((0, 0), (0, 0), (0, cat_pad - cat)))    # (b, c, cat_pad)

    out = pl.pallas_call(
        _gather_means_kernel,
        out_shape=jax.ShapeDtypeStruct((b, c, hw_pad), jnp.float32),
        grid_spec=pltpu.PrefetchScalarGridSpec(
            num_scalar_prefetch=0,
            grid=(b, nt),
            in_specs=[pl.BlockSpec((1, 1, tile), lambda ib, it: (ib, 0, it)),
                      pl.BlockSpec((1, c, cat_pad), lambda ib, it: (ib, 0, 0))],
            out_specs=pl.BlockSpec((1, c, tile), lambda ib, it: (ib, 0, it))),
        compiler_params=pltpu.CompilerParams(
            dimension_semantics=("parallel", "parallel")),
    )(idx3, rk_t)
    return out[:, :, :HW]


# ---------------------------------------------------------------------------
# Pallas kernel 3: fused contrastive loss, tiled over query rows.
#   q      : (Mp, Cp) query means, block = one (TILE_Q, Cp) row tile
#   k, g   : (Mp, Cp) key / optional global means, resident full blocks
#   vf     : (Mp, 1)  column-validity (reference: sum(q)!=0 & sum(k)!=0)
#   out    : (nq, 8, 128); per-tile lane 0 = masked loss partial (both terms),
#            lane 1 = valid-row count partial.
# Padded rows/lanes are zero -> invalid -> masked; the diagonal positive stays
# in the denominator, matching the reference at proportion == 1.0.
# ---------------------------------------------------------------------------
def _contrastive_kernel(*refs, temperature, has_global, tile_q):
    if has_global:
        q_ref, k_ref, vf_ref, g_ref, o_ref = refs
    else:
        q_ref, k_ref, vf_ref, o_ref = refs
        g_ref = None

    i = pl.program_id(0)
    row_start = pl.multiple_of(i * tile_q, tile_q)

    q = q_ref[...]                                        # (TILE_Q, Cp) f32
    vf = vf_ref[...]                                      # (Mp, 1) f32
    vrow = vf_ref[pl.ds(row_start, tile_q), :]            # (TILE_Q, 1) f32

    def l2norm(x):  # F.normalize(x, dim=1) (eps guarded), EUP rsqrt
        ss = jnp.sum(x * x, axis=1, keepdims=True)
        return x * lax.rsqrt(jnp.maximum(ss, 1e-24))

    qn = l2norm(q)
    inv_t = 1.0 / temperature

    def term(s_ref):
        sn = l2norm(s_ref[...])                           # (Mp, Cp) f32
        # bf16 MXU matmul, f32 accumulate (~1e-3 deviation from f32 reference).
        logits = lax.dot_general(qn.astype(jnp.bfloat16), sn.astype(jnp.bfloat16),
                                 (((1,), (1,)), ((), ())),
                                 preferred_element_type=jnp.float32) * inv_t
        # positive: row-wise dot of qn with the matching key row (f32).
        sn_tile = l2norm(s_ref[pl.ds(row_start, tile_q), :])
        pos = jnp.sum(qn * sn_tile, axis=1, keepdims=True) * inv_t    # (TQ, 1)
        # stable masked log-sum-exp: row-max subtraction (invalid columns have
        # logit 0 <= 1/T, so the unmasked max is a valid upper bound).
        m = jnp.max(logits, axis=1, keepdims=True)
        negsum = lax.dot_general(jnp.exp(logits - m), vf, (((1,), (0,)), ((), ())),
                                 preferred_element_type=jnp.float32)  # (TQ, 1)
        per = m + jnp.log(jnp.maximum(negsum, 1e-30)) - pos   # -log(e^pos/neg)
        return jnp.sum(per * vrow)

    total = term(k_ref)
    if has_global:
        total = total + term(g_ref)
    nvalid_part = jnp.sum(vrow)

    sub = lax.broadcasted_iota(jnp.int32, (1, 8, 128), 1)
    lane = lax.broadcasted_iota(jnp.int32, (1, 8, 128), 2)
    o_ref[...] = jnp.where((sub == 0) & (lane == 0), total,
                           jnp.where((sub == 0) & (lane == 1), nvalid_part, 0.0))


def contrastive_loss(q, k, g, temperature, weight):
    """q, k, g: (Mp, Cp) zero-padded reduced grids (Mp multiple of 128)."""
    Mp, Cp = q.shape
    tile_q = 256 if (Mp % 256 == 0 and Mp >= 256) else 128
    nq = Mp // tile_q
    has_global = g is not None

    # Column validity (reference mask_valid_grid), exact f32 in the wrapper.
    vf = jnp.logical_and(jnp.sum(q, axis=1) != 0.0,
                         jnp.sum(k, axis=1) != 0.0).astype(jnp.float32)[:, None]

    n_full = 3 if has_global else 2
    est = (2 * 4 * (tile_q * Cp + n_full * Mp * Cp + Mp + 8 * 128)
           + 4 * 4 * tile_q * Mp + (2 << 20))
    vmem_limit = int(min(max(est, 32 << 20), 48 << 20))
    # TODO(synk): for very large Mp also tile the key/column dimension.

    in_specs = [pl.BlockSpec((tile_q, Cp), lambda i: (i, 0)),
                pl.BlockSpec((Mp, Cp), lambda i: (0, 0)),
                pl.BlockSpec((Mp, 1), lambda i: (0, 0))]
    args = [q, k, vf]
    if has_global:
        in_specs.append(pl.BlockSpec((Mp, Cp), lambda i: (0, 0)))
        args.append(g)

    kern = functools.partial(_contrastive_kernel, temperature=temperature,
                             has_global=has_global, tile_q=tile_q)
    out = pl.pallas_call(
        kern,
        out_shape=jax.ShapeDtypeStruct((nq, 8, 128), jnp.float32),
        grid_spec=pltpu.PrefetchScalarGridSpec(
            num_scalar_prefetch=0,
            grid=(nq,),
            in_specs=in_specs,
            out_specs=pl.BlockSpec((1, 8, 128), lambda i: (i, 0, 0))),
        compiler_params=pltpu.CompilerParams(
            dimension_semantics=("parallel",),
            vmem_limit_bytes=vmem_limit),
    )(*args)

    total = jnp.sum(out[:, 0, 0])
    nvalid = jnp.maximum(jnp.sum(out[:, 0, 1]), 1.0)
    return total / nvalid * weight


# ---------------------------------------------------------------------------
# JAX glue: bilinear grid_sample (align_corners=False, zeros) split into a
# static vertical 2-tap blend (iy/wy depend only on the row index, not disp)
# plus two dynamic horizontal gathers, then warp / occlusion mask.
# ---------------------------------------------------------------------------
def warp(img, disp):
    b, c, h, w = img.shape
    dt = img.dtype

    # Vertical taps: fixed per output row (align_corners=False), independent
    # of disparity -> static 2-tap blend.
    y_base = jnp.linspace(0.0, 1.0, h)                      # (h,)
    iy = y_base * h - 0.5                                   # ((2y-1+1)*h-1)/2
    iy0 = jnp.floor(iy)
    iy1 = iy0 + 1.0
    wy1 = iy - iy0
    wy0 = 1.0 - wy1
    vy0 = ((iy0 >= 0) & (iy0 <= h - 1)).astype(dt)
    vy1 = ((iy1 >= 0) & (iy1 <= h - 1)).astype(dt)
    iy0c = jnp.clip(iy0, 0, h - 1).astype(jnp.int32)
    iy1c = jnp.clip(iy1, 0, h - 1).astype(jnp.int32)
    img_v = (img[:, :, iy0c, :] * (wy0 * vy0)[None, None, :, None]
             + img[:, :, iy1c, :] * (wy1 * vy1)[None, None, :, None])

    # Horizontal taps: per-pixel dynamic (depend on disparity).
    x_base = jnp.linspace(0.0, 1.0, w)[None, None, :]       # (1, 1, w)
    gx = 2.0 * (x_base + disp[:, 0, :, :] / w) - 1.0        # (b, h, w)
    ix = ((gx + 1.0) * w - 1.0) / 2.0
    ix0 = jnp.floor(ix)
    ix1 = ix0 + 1.0
    wx1 = ix - ix0
    wx0 = 1.0 - wx1

    def hgather(xi, wxi):
        valid = ((xi >= 0) & (xi <= w - 1)).astype(dt)
        xc = jnp.clip(xi, 0, w - 1).astype(jnp.int32)
        g = jnp.take_along_axis(
            img_v, jnp.broadcast_to(xc[:, None], (b, c, h, w)), axis=3)
        return g * (wxi * valid)[:, None]

    # TODO(synk): move this horizontal 1-D gather into a Pallas one-hot kernel
    # for production H*W.
    return hgather(ix0, wx0) + hgather(ix1, wx1)


def get_occ_mask(left_disp, right_disp, threshold=3.0):
    b, _, h, w = left_disp.shape
    index = jnp.broadcast_to(
        jnp.arange(w, dtype=jnp.float32)[None, None, None, :], (b, 1, h, w))
    index_l2r = warp(index, right_disp)
    index_l2r2l = warp(index_l2r, -left_disp)
    return (jnp.abs(index - index_l2r2l) < threshold).astype(jnp.float32)


# ---------------------------------------------------------------------------
# get_grid_loss equivalent.
# ---------------------------------------------------------------------------
def grid_loss(feat_q, feat_k, mask, index, num_h, num_w, temperature, weight,
              num_classes, global_rep=None):
    b, c, h, w = feat_q.shape
    G = num_h * num_w
    CAT = num_classes * G + 1       # static upper bound on max(index_grid) + 2
    HW = h * w

    cell_h, cell_w = h // num_h, w // num_w
    hp, wp = cell_h * num_h, cell_w * num_w
    ys, xs = jnp.arange(h), jnp.arange(w)
    grid_num = (ys[:, None] // cell_h) * num_w + (xs[None, :] // cell_w)
    in_region = (ys[:, None] < hp) & (xs[None, :] < wp)
    grid_num = jnp.where(in_region, grid_num, 0).astype(jnp.int32)      # (h, w)

    idx_grid = index.astype(jnp.int32) * G + grid_num[None]             # (b,h,w)
    idx_grid = jnp.where(mask, idx_grid, CAT - 1)   # occluded pixels -> dump slot
    idx_flat = idx_grid.reshape(b, HW)

    feats = [feat_q.reshape(b, c, HW), feat_k.reshape(b, c, HW)]
    if global_rep is not None:
        feats.append(global_rep.reshape(b, c, HW))
    means = segment_mean(idx_flat, feats, CAT)          # (b, CAT, n_feats*c)

    rq, rk = means[..., :c], means[..., c:2 * c]        # (b, CAT, c)
    gathered = gather_means(idx_flat, rk, CAT)          # (b, c, HW)

    M = b * (CAT - 1)
    Mp = _round_up(M, 128)                              # lane-dense logits/negsum
    Cp = _round_up(c, 128)

    def pack(x):  # (b, CAT, c) -> (Mp, Cp): drop dump slot, zero-pad lanes/rows
        flat = x[:, :CAT - 1, :].reshape(M, c)
        return jnp.pad(flat, ((0, Mp - M), (0, Cp - c)))

    g_packed = pack(means[..., 2 * c:3 * c]) if global_rep is not None else None
    loss = contrastive_loss(pack(rq), pack(rk), g_packed, temperature, weight)
    return loss, gathered


# ---------------------------------------------------------------------------
# Module.
# ---------------------------------------------------------------------------
class DualLevelContrastiveLoss:
    def __init__(self, dim):
        self.dim = dim  # stored but unused in forward (matches reference)

    def __call__(self, ref_fms, tgt_fms, left_object_index, right_object_index,
                 left_disp, right_disp, num_classes, proportion=1.0, weight=1.0):
        # TODO(synk): proportion < 1.0 needs in-kernel per-row top-k sorted negatives.
        assert proportion == 1.0
        b, c, h, w = ref_fms.shape
        assert ref_fms.shape == tgt_fms.shape
        assert left_object_index.shape == right_object_index.shape
        assert left_disp.shape == right_disp.shape

        index_r = right_object_index[:, 0].astype(jnp.int32)            # (b,h,w)
        feat_l2r = warp(ref_fms, right_disp)
        mask_occ_l2r = get_occ_mask(-right_disp, -left_disp)[:, 0].astype(bool)
        # feat_r2l / mask_occ_r2l are computed but never used in the reference loss.

        # Deterministic stand-in for random.choice(base_grid_size) / factor.
        num_h, num_w, factor = 2, 2, 2

        loss_base, keys_base = grid_loss(feat_l2r, tgt_fms, mask_occ_l2r, index_r,
                                         num_h, num_w, 0.05, weight, num_classes)
        loss_sub, _ = grid_loss(feat_l2r, tgt_fms, mask_occ_l2r, index_r,
                                num_h * factor, num_w * factor, 0.05, weight,
                                num_classes, global_rep=keys_base)
        return {"loss_dual_level_contrastive": (loss_base + loss_sub) / 2.0}


if __name__ == "__main__":
    key = jax.random.PRNGKey(0)
    b, c, h, w = 2, 8, 16, 16
    num_classes = 3
    ks = jax.random.split(key, 6)
    ref_fms = jax.random.normal(ks[0], (b, c, h, w), jnp.float32)
    tgt_fms = jax.random.normal(ks[1], (b, c, h, w), jnp.float32)
    left_obj = jax.random.randint(ks[2], (b, 1, h, w), 0, num_classes, jnp.int32)
    right_obj = jax.random.randint(ks[3], (b, 1, h, w), 0, num_classes, jnp.int32)
    left_disp = jax.random.uniform(ks[4], (b, 1, h, w), jnp.float32, 0.0, 3.0)
    right_disp = jax.random.uniform(ks[5], (b, 1, h, w), jnp.float32, 0.0, 3.0)

    module = DualLevelContrastiveLoss(dim=c)
    out = module(ref_fms, tgt_fms, left_obj, right_obj, left_disp, right_disp,
                 num_classes)
    loss = jax.block_until_ready(out["loss_dual_level_contrastive"])
    assert bool(jnp.isfinite(loss))
    print("KERNEL_OK")
</pallas_src>

<mosaic_0001>
module attributes {stable_mosaic.version = 11 : i64} {
  func.func @_segsum_kernel(%arg0: i32, %arg1: i32, %arg2: memref<1x1x256xi32, #tpu.memory_space<vmem>>, %arg3: memref<1x8x256xf32, #tpu.memory_space<vmem>>, %arg4: memref<1x8x256xf32, #tpu.memory_space<vmem>>, %arg5: memref<1x16x128xf32, #tpu.memory_space<vmem>>) attributes {dimension_semantics = [#tpu.dimension_semantics<parallel>, #tpu.dimension_semantics<arbitrary>], iteration_bounds = array<i64: 2, 1>, scalar_prefetch = 0 : i64, scratch_operands = 0 : i64, tpu.core_type = #tpu.core_type<tc>, window_params = [{transform_indices = @transform_0, window_bounds = array<i64: 1, 1, 256>}, {transform_indices = @transform_1, window_bounds = array<i64: 1, 8, 256>}, {transform_indices = @transform_2, window_bounds = array<i64: 1, 8, 256>}, {transform_indices = @transform_3, window_bounds = array<i64: 1, 16, 128>}]} {
    %c0_i32 = arith.constant 0 : i32
    %0 = arith.cmpi eq, %arg1, %c0_i32 : i32
    %1 = arith.extui %0 : i1 to i32
    %c0_i32_0 = arith.constant 0 : i32
    %2 = arith.cmpi ne, %1, %c0_i32_0 : i32
    scf.if %2 {
      %cst_16 = arith.constant 0.000000e+00 : f32
      %29 = vector.broadcast %cst_16 : f32 to vector<1x16x128xf32>
      %c0_17 = arith.constant 0 : index
      %c0_18 = arith.constant 0 : index
      %c0_19 = arith.constant 0 : index
      %30 = vector.load %arg5[%c0_17, %c0_18, %c0_19] : memref<1x16x128xf32, #tpu.memory_space<vmem>>, vector<1x16x128xf32>
      tpu.vector_store %arg5[%c0_17, %c0_18, %c0_19], %29 {strides = array<i32>} : memref<1x16x128xf32, #tpu.memory_space<vmem>>, vector<1x16x128xf32>,
    } else {
    }
    %c0 = arith.constant 0 : index
    %c0_1 = arith.constant 0 : index
    %c0_2 = arith.constant 0 : index
    %3 = vector.load %arg2[%c0, %c0_1, %c0_2] : memref<1x1x256xi32, #tpu.memory_space<vmem>>, vector<1x1x256xi32>
    %4 = vector.shape_cast %3 : vector<1x1x256xi32> to vector<1x256xi32>
    %5 = tpu.iota {dimensions = array<i32: 0>} : vector<16x256xi32>
    %6 = vector.broadcast %4 : vector<1x256xi32> to vector<16x256xi32>
    %7 = arith.cmpi eq, %5, %6 : vector<16x256xi32>
    %8 = arith.extui %7 : vector<16x256xi1> to vector<16x256xi32>
    %9 = arith.sitofp %8 : vector<16x256xi32> to vector<16x256xf32>
    %10 = arith.truncf %9 : vector<16x256xf32> to vector<16x256xbf16>
    %11 = tpu.iota {dimensions = array<i32: 0>} : vector<112x256xi32>
    %c0_i32_3 = arith.constant 0 : i32
    %12 = vector.broadcast %c0_i32_3 : i32 to vector<112x256xi32>
    %13 = arith.cmpi eq, %11, %12 : vector<112x256xi32>
    %14 = arith.extui %13 : vector<112x256xi1> to vector<112x256xi32>
    %15 = arith.sitofp %14 : vector<112x256xi32> to vector<112x256xf32>
    %c0_4 = arith.constant 0 : index
    %c0_5 = arith.constant 0 : index
    %c0_6 = arith.constant 0 : index
    %16 = vector.load %arg3[%c0_4, %c0_5, %c0_6] : memref<1x8x256xf32, #tpu.memory_space<vmem>>, vector<1x8x256xf32>
    %17 = vector.shape_cast %16 : vector<1x8x256xf32> to vector<8x256xf32>
    %c0_7 = arith.constant 0 : index
    %c0_8 = arith.constant 0 : index
    %c0_9 = arith.constant 0 : index
    %18 = vector.load %arg4[%c0_7, %c0_8, %c0_9] : memref<1x8x256xf32, #tpu.memory_space<vmem>>, vector<1x8x256xf32>
    %19 = vector.shape_cast %18 : vector<1x8x256xf32> to vector<8x256xf32>
    %20 = tpu.concatenate %17, %19, %15 in 0 : vector<8x256xf32>, vector<8x256xf32>, vector<112x256xf32> -> vector<128x256xf32>
    %21 = arith.truncf %20 : vector<128x256xf32> to vector<128x256xbf16>
    %cst = arith.constant dense<0.000000e+00> : vector<16x128xf32>
    %22 = tpu.matmul %10, %21, %cst {dimension_numbers = #tpu.dot_dimension_numbers<[1], [1], [0], [0], [0, 0, 1, 0], [], []>} : vector<16x256xbf16>, vector<128x256xbf16>, vector<16x128xf32> -> vector<16x128xf32>
    %c0_10 = arith.constant 0 : index
    %c0_11 = arith.constant 0 : index
    %c0_12 = arith.constant 0 : index
    %23 = vector.load %arg5[%c0_10, %c0_11, %c0_12] : memref<1x16x128xf32, #tpu.memory_space<vmem>>, vector<1x16x128xf32>
    %24 = vector.shape_cast %23 : vector<1x16x128xf32> to vector<16x128xf32>
    %25 = arith.addf %24, %22 : vector<16x128xf32>
    %c0_13 = arith.constant 0 : index
    %c0_14 = arith.constant 0 : index
    %c0_15 = arith.constant 0 : index
    %26 = vector.load %arg5[%c0_13, %c0_14, %c0_15] : memref<1x16x128xf32, #tpu.memory_space<vmem>>, vector<1x16x128xf32>
    %27 = vector.shape_cast %26 : vector<1x16x128xf32> to vector<16x128xf32>
    %28 = vector.shape_cast %25 : vector<16x128xf32> to vector<1x16x128xf32>
    tpu.vector_store %arg5[%c0_13, %c0_14, %c0_15], %28 {strides = array<i32>} : memref<1x16x128xf32, #tpu.memory_space<vmem>>, vector<1x16x128xf32>,
    return
  }
  func.func @transform_0(%arg0: i32, %arg1: i32) -> (i32, i32, i32) {
    %c0_i32 = arith.constant 0 : i32
    %c0_i32_0 = arith.constant 0 : i32
    return %arg0, %c0_i32, %arg1 : i32, i32, i32
  }
  func.func @transform_1(%arg0: i32, %arg1: i32) -> (i32, i32, i32) {
    %c0_i32 = arith.constant 0 : i32
    %c0_i32_0 = arith.constant 0 : i32
    return %arg0, %c0_i32, %arg1 : i32, i32, i32
  }
  func.func @transform_2(%arg0: i32, %arg1: i32) -> (i32, i32, i32) {
    %c0_i32 = arith.constant 0 : i32
    %c0_i32_0 = arith.constant 0 : i32
    return %arg0, %c0_i32, %arg1 : i32, i32, i32
  }
  func.func @transform_3(%arg0: i32, %arg1: i32) -> (i32, i32, i32) {
    %c0_i32 = arith.constant 0 : i32
    %c0_i32_0 = arith.constant 0 : i32
    %c0_i32_1 = arith.constant 0 : i32
    return %arg0, %c0_i32, %c0_i32_0 : i32, i32, i32
  }
}

</mosaic_0001>

<bundles_post_ra>
// kernel: tpu_custom_call.1
= control target key start
LH: loop header
LB: loop body
LE: loop exit
PB: predicated region body
PF: predicated region fallthrough
CT: control target
= control target key end

     0   :  { %s1047_s0 = inlined_call_operand.hbm [shape: s32[2,1,256], index: 0, kind: input, shape index: {}]   ;;  %s1048_s1 = inlined_call_operand.hbm [shape: f32[2,8,256], index: 1, kind: input, shape index: {}]   ;;  %s1049_s2 = inlined_call_operand.hbm [shape: f32[2,8,256], index: 2, kind: input, shape index: {}]   ;;  %s1050_s3 = inlined_call_operand.hbm [shape: f32[2,16,128], index: 3, kind: output, shape index: {}]  }
   0x1   :  { %1052 = sst [smem:[#allocation14_spill]] %s1048_s1 }
   0x2   :  { %8 = vsyncpa [#allocation3], 0 }
   0x3   :  { %10 = vsyncpa [#allocation3 + $0x1], 0 }
   0x4   :  { %11 = vsyncpa [#allocation6], 0 }
   0x5   :  { %13 = vsyncpa [#allocation6 + $0x1], 0 }
   0x6   :  { %14 = vsyncpa [#allocation4], 0 }
   0x7   :  { %16 = vsyncpa [#allocation4 + $0x1], 0  ;;  %s888_s12 = smov 0   ;;  %s890_s13 = smov 0  }
   0x8   :  { %s892_s14 = smov 0   ;;  %s894_s15 = smov 0  }
   0x9   :  { %s896_s16 = smov 0   ;;  %s898_s17 = smov 0  }
   0xa LB: > { %s919_s18 = sadd.s32 4294967295, %s861_s17   ;;  %s568_s19 = sadd.s32 4294967294, %s861_s17   ;;  %s861_s17 = sphi %s898_s17, %s22_s17   ;;  %s857_s16 = sphi %s896_s16, %s1068_s16   ;;  %s853_s15 = sphi %s894_s15, %s1067_s15   ;;  %s849_s14 = sphi %s892_s14, %s1066_s14   ;;  %s845_s13 = sphi %s890_s13, %s1065_s13   ;;  %s841_s12 = sphi %s888_s12, %s1064_s12  }
   0xb   : > { %s34_s20 = sadd.s32 1, %s857_s16  ;;  %s43_s21 = sadd.s32 1, %s849_s14 }
   0xc   : > { %p36_p0 = scmp.ge.s32.totalorder %s34_s20, 2  ;;  %p50_p1 = scmp.ne.s32.totalorder %s849_s14, %s845_s13 }
   0xd   : > { %p51_p2 = scmp.eq.s32.totalorder %s861_s17, 0  ;;  %p56_p3 = scmp.ne.s32.totalorder %s845_s13, %s841_s12 }
   0xe   : > { %s1070_s20 = smov (%p36_p0, %s34_s20), 0  ;;  %p57_p5 = scmp.eq.s32.totalorder %s919_s18, 0 }
   0xf   : > { %1053 = sst [smem:[#allocation12_spill]] %s1070_s20  ;;  %p931_p4 = por %p51_p2, %p50_p1 }
  0x10   : > { %s38_s23 = ssub.s32 %s857_s16, %s1070_s20  ;;  %p136_p6 = scmp.eq.s32.totalorder %s919_s18, 1 }
  0x11   : > { %p41_p7 = scmp.eq.s32.totalorder %s38_s23, 0  ;;  %p939_p8 = por %p57_p5, %p56_p3 }
  0x12   : > { %p943_p9 = por %p136_p6, %p50_p1  ;;  %p142_p10 = scmp.eq.s32.totalorder %s568_s19, 1 }
  0x13   : > { %s948_s26 = scalar_select %p41_p7, %s849_s14, %s43_s21  }
  0x14   : > { %p950_p11 = por %p142_p10, %p56_p3  ;;  %p570_p12 = scmp.ge.s32.totalorder %s861_s17, 2 }
  0x15   : > { %1057 = sst [smem:[#allocation13_spill]] %s948_s26  ;;  %p629_p13 = scmp.lt.s32.totalorder %s861_s17, 2 }
  0x16   : > { %s162_s28 = sand.u32 1, %s849_s14   ;;  %s183_s29 = sand.u32 1, %s861_s17  }
  0x17   : > { %s573_s30 = sshll.u32 %s162_s28, 4  ;;  %p960_p0 = pnand %p629_p13, %p931_p4 }
  0x18   : > { %s604_s5 = sshll.u32 %s857_s16, 4  ;;  %s1060_s1 = sld [smem:[#allocation14_spill]] }
  0x19   : > { %s187_s10 = scalar_lea.vmem [#allocation5], %s573_s30  ;;  %s184_s19 = scalar_lea.sflag [#allocation6], %s183_s29 }
  0x1a   : > { %s198_s11 = sshll.u32 %s187_s10, 4  ;;  %s216_s23 = scalar_lea.hbm %s1049_s2, %s604_s5  ;;  %s199_s11 = int_to_ptr.vmem [resolvable:$true] %s198_s11 }
  0x1b   : > { %p579_p1 = scmp.ge.s32.totalorder %s861_s17, 1  ;;  %p225_p2 = scmp.lt.s32.totalorder %s861_s17, 3 }
  0x1c   : > { %s571_s6 = sshll.u32 %s162_s28, 1  ;;  %s572_s7 = sshll.u32 %s857_s16, 1 }
  0x1d   : > { %p975_p3 = pnand %p579_p1, %p225_p2  ;;  %s166_s26 = scalar_lea.vmem [#allocation2], %s571_s6 }
  0x1e   : > { %s194_s8 = scalar_lea.hbm %s1060_s1, %s604_s5  ;;  %s172_s1 = scalar_lea.hbm %s1047_s0, %s572_s7 }
  0x1f   : > { %s196_s9 = sshll.u32 %s194_s8, 4  ;;  %s174_s29 = sshll.u32 %s172_s1, 4  ;;  %s197_s9 = int_to_ptr.hbm [resolvable:$true] %s196_s9  ;;  %s175_s29 = int_to_ptr.hbm [resolvable:$true] %s174_s29 }
  0x20   : > { %621 = dma.hbm_to_vmem [thread:$0]  (!%p960_p0), %s197_s9, 256, %s199_s11, %s184_s19  }
  0x21   : > { %s176_s9 = sshll.u32 %s166_s26, 4  ;;  %s163_s11 = scalar_lea.sflag [#allocation3], %s162_s28  ;;  %s177_s9 = int_to_ptr.vmem [resolvable:$true] %s176_s9 }
  0x22   : > { %618 = dma.hbm_to_vmem [thread:$0]  (!%p960_p0), %s175_s29, 32, %s177_s9, %s163_s11  }
  0x23   : > { %s218_s5 = sshll.u32 %s216_s23, 4  ;;  %s209_s21 = scalar_lea.vmem [#allocation7], %s573_s30  ;;  %s219_s5 = int_to_ptr.hbm [resolvable:$true] %s218_s5 }
  0x24   : > { %s220_s22 = sshll.u32 %s209_s21, 4  ;;  %229 = sbr.rel (%p975_p3) target bundleno = 206 (0xce), region = 32  ;;  %s221_s22 = int_to_ptr.vmem [resolvable:$true] %s220_s22 }
  0x25   : > { %624 = dma.hbm_to_vmem [thread:$0]  (!%p960_p0), %s219_s5, 256, %s221_s22, %s184_s19  }
  0x26   : > { %s990_s1 = sand.u32 (!%p975_p3), 1, %s845_s13  }
  0x27   : > { %s580_s26 = sshll.u32 (!%p975_p3), %s990_s1, 1  ;;  %s232_s28 = scalar_lea.sflag (!%p975_p3), [#allocation3], %s990_s1 }
  0x28   : > { %s235_s6 = scalar_lea.vmem (!%p975_p3), [#allocation2], %s580_s26 }
  0x29   : > { %828 = dma.done.wait (%p939_p8), %s232_s28, 32  }
  0x2a   : > { %830 = vsyncadd (%p939_p8), %s232_s28, 4294967264  ;;  %s241_s30 = sand.u32 1, %s919_s18   ;;  %s1000_s20 = sshll.u32 %s990_s1, 4 }
  0x2b   : > { %s242_s4 = scalar_lea.sflag [#allocation6], %s241_s30  ;;  %s245_s19 = scalar_lea.vmem [#allocation5], %s1000_s20 }
  0x2c   : > { %832 = dma.done.wait (%p939_p8), %s242_s4, 512  }
  0x2d   : > { %834 = vsyncadd (%p939_p8), %s242_s4, 4294966784  ;;  %v299_v0 = vlaneseq  ;;  %v863_v2 = vmov 1.0   ;;  %vm864_vm1 = vmmov 1   ;;  %v372_v4 = vld [vmem:[%s245_s19] sm:$0xff]  ;;  %s255_s18 = scalar_lea.vmem [#allocation7], %s1000_s20  ;;  %v373_v6 = vld [vmem:[%s245_s19 + $0x8] sm:$0xff] }
  0x2e   : > { %v590_v3 = vpack.c.bf16 0.0, %v863_v2  ;;  %v374_v5 = vld [vmem:[%s255_s18] sm:$0xff]  ;;  %v375_v7 = vld [vmem:[%s255_s18 + $0x8] sm:$0xff]  ;;  %v865_v14 = vmov 1.0|1.0   ;;  %s606_s24 = sshll.u32 %s853_s15, 4 }
  0x2f   : > { %v300_v1 = vshrl.u32 %v299_v0, 7  ;;  %v298_v8 = vld [vmem:[%s235_s6] sm:$0x3]  ;;  %v376_v9 = vpack.c.bf16 %v374_v5, %v372_v4  ;;  %v377_v10 = vpack.c.bf16 %v375_v7, %v373_v6  ;;  %s431_s8 = scalar_lea.hbm %s1050_s3, %s606_s24  ;;  %s288_s10 = scalar_lea.vmem [#allocation8], %s1000_s20 }
  0x30   : > { %v302_v12 = vperm.slane %v298_v8, 0  ;;  %v303_v13 = vperm.slane %v298_v8, 1  ;;  %s432_s29 = sshll.u32 %s288_s10, 4  ;;  %s434_s9 = sshll.u32 %s431_s8, 4  ;;  %s433_s29 = int_to_ptr.vmem [resolvable:$true] %s432_s29  ;;  %s435_s9 = int_to_ptr.hbm [resolvable:$true] %s434_s9 }
  0x31   : > { %vm330_vm0 = vcmp.eq.s32.totalorder %v300_v1, 0  ;;  %v301_v11 = vadd.s32 8, %v300_v1  ;;  %s420_s11 = scalar_lea.sflag [#allocation4], %s990_s1  ;;  %s789_s5 = sshra.s32 %s435_s9, 4  ;;  %s790_s5 = int_to_ptr.hbm [resolvable:$true] %s789_s5 }
  0x32   : > { %vm589_vm2 = vmpackc.low %vm864_vm1, %vm330_vm0  ;;  %vm304_vm3 = vcmp.eq.s32.totalorder %v300_v1, %v302_v12  ;;  %vm305_vm5 = vcmp.eq.s32.totalorder %v300_v1, %v303_v13  ;;  %s791_s21 = scalar_lea.hbm %s790_s5, 16  ;;  %s795_s26 = scalar_lea.hbm %s1050_s3, 32 }
  0x33   : > { %591 = vmatpush.bf16.xpose.msk.msra.mxu0 %vm589_vm2, %v590_v3  ;;  %596 = vmatpush.bf16.xpose.msk.msra.mxu1 %vm589_vm2, %v590_v3  ;;  %vm306_vm4 = vcmp.eq.s32.totalorder %v301_v11, %v302_v12  ;;  %vm307_vm6 = vcmp.eq.s32.totalorder %v301_v11, %v303_v13  ;;  %p792_p4 = scmp.ne.s32.totalorder %s790_s5, %s791_s21  ;;  %p796_p7 = scmp.lt.s32.totalorder %s790_s5, %s1050_s3 }
  0x34   : > { %vm592_vm7 = vmpackc.low %vm306_vm4, %vm304_vm3  ;;  %p797_p8 = scmp.lt.s32.totalorder %s795_s26, %s791_s21 }
  0x35   : > { %vm597_vm8 = vmpackc.low %vm307_vm6, %vm305_vm5  ;;  %p793_p5 = pnand %p792_p4, %p943_p9 }
  0x36   : > { %p798_p10 = por %p797_p8, %p796_p7 }
  0x37   : > { %p794_p6 = pneg %p793_p5 }
  0x39   : > { %p799_p13 = pnand %p798_p10, %p794_p6 }
  0x3b   : > { %392 = vmatpush.bf16.xpose.msra.mxu0 %v376_v9  ;;  %406 = vmatpush.bf16.xpose.msra.mxu1 %v377_v10 }
  0x42   : > { %593 = vmatmul.msk.bf16.vlgmr.msra.gmra.mxu0 %vm592_vm7, %v865_v14  ;;  %598 = vmatmul.msk.bf16.vlgmr.msra.gmra.mxu1 %vm597_vm8, %v865_v14 }
  0xbf   : > { %v394_v15 = vpop.f32.mrf.mxu0  ;;  %v408_v16 = vpop.f32.mrf.mxu1 }
  0xc0   : > { %v409_v17 = vadd.f32 %v408_v16, %v394_v15 }
  0xc2   : > { %417 = vst [vmem:[%s288_s10] sm:$0xff] %v409_v17 }
  0xc7   : > { %v396_v18 = vpop.f32.mrf.mxu0  ;;  %v410_v19 = vpop.f32.mrf.mxu1 }
  0xc8   : > { %v411_v20 = vadd.f32 %v410_v19, %v396_v18 }
  0xca   : > { %418 = vst [vmem:[%s288_s10 + $0x8] sm:$0xff] %v411_v20 }
  0xcb   : > { %802 = shalt.err (!%p799_p13)
}
  0xcc   : > { %s866_s1 = smov 128   ;;  %s867_s30 = smov 8  }
  0xcd   : > { %613 = dma.vmem_to_hbm [thread:$0]  (%p943_p9), %s433_s29, 256, %s435_s9, %s420_s11, %s866_s1, %s866_s1, %s867_s30  }
  0xce PF: > { %s449_s20 = sand.u32 1, %s841_s12   ;;  %p626_p0 = pnand %p570_p12, %p950_p11 }
  0xcf   : > { %s450_s4 = scalar_lea.sflag [#allocation4], %s449_s20 }
  0xd0   : > { %p627_p1 = pneg %p626_p0 }
  0xd2   : > { %836 = dma.done.wait (%p627_p1), %s450_s4, 256  }
  0xd3   : > { %838 = vsyncadd (%p627_p1), %s450_s4, 4294967040  ;;  %s22_s17 = sadd.s32 1, %s861_s17   ;;  %s1062_s19 = sld [smem:[#allocation13_spill]] }
  0xd4   : > { %p19_p2 = scmp.ge.s32.totalorder %s22_s17, 4   ;;  %s1063_s25 = sld [smem:[#allocation12_spill]] }
  0xd5   : > { %s1064_s12 = smov %s845_s13  ;;  %s1065_s13 = smov %s849_s14 }
  0xd6   : > { %s1067_s15 = smov %s857_s16  ;;  %21 = sbr.rel (!%p19_p2) target bundleno = 10 (0xa), region = 105 }
  0xd9   : > { %s1066_s14 = smov %s1062_s19 }
  0xda   : > { %s1068_s16 = smov %s1063_s25 }
  0xdb   :  { %456 = vsyncpa [#allocation3], 1 }
  0xdc   :  { %458 = vsyncpa [#allocation3 + $0x1], 1 }
  0xdd   :  { %459 = vsyncpa [#allocation6], 1 }
  0xde   :  { %461 = vsyncpa [#allocation6 + $0x1], 1 }
  0xdf   :  { %462 = vsyncpa [#allocation4], 1 }
  0xe0   :  { %464 = vsyncpa [#allocation4 + $0x1], 1 }

</bundles_post_ra>
